<compile_context>
chip_gen: v6e
topology: v6e:2x2x1
jax: 0.10.0
libtpu: 0.0.40
codegen_flags: <defaults>
</compile_context>

<pallas_src>
import functools
import math

import jax
import jax.numpy as jnp
from jax.experimental import pallas as pl
from jax.experimental.pallas import tpu as pltpu


def _row_parallel_kernel(x_ref, w_ref, b_ref, o_ref, acc_ref, *, compute_dtype):
    k = pl.program_id(2)

    @pl.when(k == 0)
    def _():
        # Initialize the f32 accumulator with the broadcast bias; this replaces
        # both zero-init and a separate final bias add.
        acc_ref[...] = jnp.broadcast_to(b_ref[...], acc_ref.shape).astype(jnp.float32)

    # bf16 operands -> MXU native rate; accumulate in f32.
    acc_ref[...] += jnp.dot(
        x_ref[...].astype(compute_dtype),
        w_ref[...].astype(compute_dtype),
        preferred_element_type=jnp.float32,
    )

    @pl.when(k == pl.num_programs(2) - 1)
    def _():
        o_ref[...] = acc_ref[...].astype(o_ref.dtype)


def _pick_tile(dim, cap, aligns):
    """Largest tile <= cap dividing `dim` that is a multiple of one of `aligns`
    (tried in order), or the full dim if dim <= cap.  Falls back to full dim if
    no aligned divisor exists (rare awkward shapes)."""
    if dim <= cap:
        return dim
    for align in aligns:
        t = (cap // align) * align
        while t >= align:
            if dim % t == 0:
                return t
            t -= align
    # TODO(synk): pad + mask instead of full-dim fallback for huge awkward dims.
    return dim


def row_parallel_linear(
    x,
    weight_parts,
    bias,
    *,
    tm_cap=512,
    tn_cap=1024,
    tk_cap=512,
    compute_dtype=jnp.bfloat16,  # set to jnp.float32 for bit-accurate f32 matmul
):
    """
    x:            (batch, seq, input_size) float32
    weight_parts: (world_size, K_per_partition, output_size) float32
                  (per-partition weights, stored pre-transposed)
    bias:         (output_size,) float32
    returns:      (batch, seq, output_size) float32
    """
    batch, seq, input_size = x.shape
    world_size, k_p, output_size = weight_parts.shape
    assert world_size * k_p == input_size

    m = batch * seq
    x2d = x.reshape(m, input_size)
    # Concatenate partition weights along K: sum_p x_p @ W_p == x @ concat_K(W_p).
    # This folds the model-parallel all-reduce into the K reduction.
    w2d = weight_parts.reshape(input_size, output_size)
    bias2d = bias.reshape(1, output_size)

    # 256-aligned tiles fill the v6e/v7x 256x256 MXU cleanly; 128 fallback
    # covers v5e and dims that are only 128-divisible.
    tm = _pick_tile(m, tm_cap, (128, 8))
    tn = _pick_tile(output_size, tn_cap, (256, 128))
    tk = _pick_tile(input_size, tk_cap, (256, 128))

    # Megacore guard (v7x has 2 TensorCores sharded over the "parallel" axes):
    # make sure the (M,N) grid has >= 2 blocks so neither core sits idle.
    if (m // tm) * (output_size // tn) < 2:
        if tn % 2 == 0 and (tn // 2) % 128 == 0 and output_size % (tn // 2) == 0:
            tn //= 2
        elif tm % 2 == 0 and (tm // 2) % 8 == 0 and m % (tm // 2) == 0:
            tm //= 2

    grid = (m // tm, output_size // tn, input_size // tk)

    cost = pl.CostEstimate(
        flops=2 * m * output_size * input_size,
        bytes_accessed=(x2d.size + w2d.size + bias2d.size + m * output_size) * 4,
        transcendentals=0,
    )

    out2d = pl.pallas_call(
        functools.partial(_row_parallel_kernel, compute_dtype=compute_dtype),
        out_shape=jax.ShapeDtypeStruct((m, output_size), x.dtype),
        grid_spec=pltpu.PrefetchScalarGridSpec(
            num_scalar_prefetch=0,
            grid=grid,
            in_specs=[
                # x tile: rows i, K-chunk k
                pl.BlockSpec((tm, tk), lambda i, j, k: (i, k)),
                # weight tile: K-chunk k, output columns j
                pl.BlockSpec((tk, tn), lambda i, j, k: (k, j)),
                # bias tile: output columns j (same for every i, k)
                pl.BlockSpec((1, tn), lambda i, j, k: (0, j)),
            ],
            # Output tile indexed by (i, j) only -> resident across the
            # reduction axis, written back to HBM once per (i, j).
            out_specs=pl.BlockSpec((tm, tn), lambda i, j, k: (i, j)),
            # f32 accumulator scratch, persists across the K grid axis.
            scratch_shapes=[pltpu.VMEM((tm, tn), jnp.float32)],
        ),
        compiler_params=pltpu.CompilerParams(
            dimension_semantics=("parallel", "parallel", "arbitrary"),
            # Big enough for the enlarged double-buffered tiles, with headroom
            # on v7x's 64 MiB physical VMEM.
            vmem_limit_bytes=48 << 20,
        ),
        cost_estimate=cost,
    )(x2d, w2d, bias2d)

    return out2d.reshape(batch, seq, output_size)


def init_params(key, input_size, output_size, world_size):
    """Deterministic param init mirroring the PyTorch module."""
    k_p = input_size // world_size
    # xavier_normal_ on a (output_size, k_p) weight: std = sqrt(2/(fan_in+fan_out))
    std = math.sqrt(2.0 / (k_p + output_size))
    # Per-partition weights, stored transposed as (world_size, k_p, output_size).
    w = std * jax.random.normal(key, (world_size, k_p, output_size), dtype=jnp.float32)
    b = jnp.zeros((output_size,), dtype=jnp.float32)
    return w, b


if __name__ == "__main__":
    # Simulated model-parallel world size.  Shapes chosen so K/N are
    # 128-multiples (lane-dense, (8,128)-legal tiles) while staying small.
    world_size = 2
    batch, seq = 2, 8
    input_size, output_size = 512, 256

    key = jax.random.PRNGKey(0)
    kx, kw = jax.random.split(key)

    x = jax.random.normal(kx, (batch, seq, input_size), dtype=jnp.float32)
    weight_parts, bias = init_params(kw, input_size, output_size, world_size)

    out = row_parallel_linear(x, weight_parts, bias)
    out = jax.block_until_ready(out)

    # Reference: equivalent full (non-parallel) linear in f32.
    w_full_t = weight_parts.reshape(input_size, output_size)
    x2d = x.reshape(-1, input_size)
    ref_f32 = (x2d @ w_full_t + bias).reshape(batch, seq, output_size)
    # bf16-precision reference (same operand precision as the kernel's MXU path).
    ref_bf16 = (
        jnp.dot(
            x2d.astype(jnp.bfloat16),
            w_full_t.astype(jnp.bfloat16),
            preferred_element_type=jnp.float32,
        )
        + bias
    ).reshape(batch, seq, output_size)

    assert jnp.allclose(out, ref_bf16, atol=1e-2, rtol=1e-2), "mismatch vs bf16 reference"
    assert jnp.allclose(out, ref_f32, atol=2e-2, rtol=2e-2), "mismatch vs f32 reference"

    print("KERNEL_OK")
</pallas_src>

<mosaic_0001>
module attributes {stable_mosaic.version = 11 : i64} {
  func.func @_row_parallel_kernel(%arg0: i32, %arg1: i32, %arg2: i32, %arg3: memref<16x512xf32, #tpu.memory_space<vmem>>, %arg4: memref<512x128xf32, #tpu.memory_space<vmem>>, %arg5: memref<1x128xf32, #tpu.memory_space<vmem>>, %arg6: memref<16x128xf32, #tpu.memory_space<vmem>>, %arg7: memref<16x128xf32, #tpu.memory_space<vmem>>) attributes {dimension_semantics = [#tpu.dimension_semantics<parallel>, #tpu.dimension_semantics<parallel>, #tpu.dimension_semantics<arbitrary>], iteration_bounds = array<i64: 1, 2, 1>, scalar_prefetch = 0 : i64, scratch_operands = 1 : i64, tpu.core_type = #tpu.core_type<tc>, window_params = [{transform_indices = @transform_0, window_bounds = array<i64: 16, 512>}, {transform_indices = @transform_1, window_bounds = array<i64: 512, 128>}, {transform_indices = @transform_2, window_bounds = array<i64: 1, 128>}, {transform_indices = @transform_3, window_bounds = array<i64: 16, 128>}]} {
    %c0_i32 = arith.constant 0 : i32
    %0 = arith.cmpi eq, %arg2, %c0_i32 : i32
    %1 = arith.extui %0 : i1 to i32
    %c0_i32_0 = arith.constant 0 : i32
    %2 = arith.cmpi ne, %1, %c0_i32_0 : i32
    scf.if %2 {
      %c0_10 = arith.constant 0 : index
      %c0_11 = arith.constant 0 : index
      %14 = vector.load %arg5[%c0_10, %c0_11] : memref<1x128xf32, #tpu.memory_space<vmem>>, vector<1x128xf32>
      %15 = vector.shape_cast %14 : vector<1x128xf32> to vector<1x128xf32>
      %16 = vector.broadcast %15 : vector<1x128xf32> to vector<16x128xf32>
      %c0_12 = arith.constant 0 : index
      %c0_13 = arith.constant 0 : index
      %17 = vector.load %arg7[%c0_12, %c0_13] : memref<16x128xf32, #tpu.memory_space<vmem>>, vector<16x128xf32>
      tpu.vector_store %arg7[%c0_12, %c0_13], %16 {strides = array<i32>} : memref<16x128xf32, #tpu.memory_space<vmem>>, vector<16x128xf32>,
    } else {
    }
    %c0 = arith.constant 0 : index
    %c0_1 = arith.constant 0 : index
    %3 = vector.load %arg7[%c0, %c0_1] : memref<16x128xf32, #tpu.memory_space<vmem>>, vector<16x128xf32>
    %c0_2 = arith.constant 0 : index
    %c0_3 = arith.constant 0 : index
    %4 = vector.load %arg3[%c0_2, %c0_3] : memref<16x512xf32, #tpu.memory_space<vmem>>, vector<16x512xf32>
    %5 = arith.truncf %4 : vector<16x512xf32> to vector<16x512xbf16>
    %c0_4 = arith.constant 0 : index
    %c0_5 = arith.constant 0 : index
    %6 = vector.load %arg4[%c0_4, %c0_5] : memref<512x128xf32, #tpu.memory_space<vmem>>, vector<512x128xf32>
    %7 = arith.truncf %6 : vector<512x128xf32> to vector<512x128xbf16>
    %cst = arith.constant dense<0.000000e+00> : vector<16x128xf32>
    %8 = tpu.matmul %5, %7, %cst {dimension_numbers = #tpu.dot_dimension_numbers<[1], [0], [0], [1], [0, 0, 1, 1], [], []>} : vector<16x512xbf16>, vector<512x128xbf16>, vector<16x128xf32> -> vector<16x128xf32>
    %9 = arith.addf %3, %8 : vector<16x128xf32>
    %c0_6 = arith.constant 0 : index
    %c0_7 = arith.constant 0 : index
    %10 = vector.load %arg7[%c0_6, %c0_7] : memref<16x128xf32, #tpu.memory_space<vmem>>, vector<16x128xf32>
    tpu.vector_store %arg7[%c0_6, %c0_7], %9 {strides = array<i32>} : memref<16x128xf32, #tpu.memory_space<vmem>>, vector<16x128xf32>,
    %c0_i32_8 = arith.constant 0 : i32
    %11 = arith.cmpi eq, %arg2, %c0_i32_8 : i32
    %12 = arith.extui %11 : i1 to i32
    %c0_i32_9 = arith.constant 0 : i32
    %13 = arith.cmpi ne, %12, %c0_i32_9 : i32
    scf.if %13 {
      %c0_10 = arith.constant 0 : index
      %c0_11 = arith.constant 0 : index
      %14 = vector.load %arg7[%c0_10, %c0_11] : memref<16x128xf32, #tpu.memory_space<vmem>>, vector<16x128xf32>
      %c0_12 = arith.constant 0 : index
      %c0_13 = arith.constant 0 : index
      %15 = vector.load %arg6[%c0_12, %c0_13] : memref<16x128xf32, #tpu.memory_space<vmem>>, vector<16x128xf32>
      tpu.vector_store %arg6[%c0_12, %c0_13], %14 {strides = array<i32>} : memref<16x128xf32, #tpu.memory_space<vmem>>, vector<16x128xf32>,
    } else {
    }
    return
  }
  func.func @transform_0(%arg0: i32, %arg1: i32, %arg2: i32) -> (i32, i32) {
    %c0_i32 = arith.constant 0 : i32
    return %arg0, %arg2 : i32, i32
  }
  func.func @transform_1(%arg0: i32, %arg1: i32, %arg2: i32) -> (i32, i32) {
    %c0_i32 = arith.constant 0 : i32
    return %arg2, %arg1 : i32, i32
  }
  func.func @transform_2(%arg0: i32, %arg1: i32, %arg2: i32) -> (i32, i32) {
    %c0_i32 = arith.constant 0 : i32
    %c0_i32_0 = arith.constant 0 : i32
    return %c0_i32, %arg1 : i32, i32
  }
  func.func @transform_3(%arg0: i32, %arg1: i32, %arg2: i32) -> (i32, i32) {
    %c0_i32 = arith.constant 0 : i32
    return %arg0, %arg1 : i32, i32
  }
}

</mosaic_0001>

<bundles_post_ra>
// kernel: tpu_custom_call.1
= control target key start
LH: loop header
LB: loop body
LE: loop exit
PB: predicated region body
PF: predicated region fallthrough
CT: control target
= control target key end

     0   :  { %8 = vsyncpa [#allocation4], 0  ;;  %s1166_s0 = inlined_call_operand.hbm [shape: f32[16,512], index: 0, kind: input, shape index: {}]   ;;  %s1167_s1 = inlined_call_operand.hbm [shape: f32[512,256], index: 1, kind: input, shape index: {}]   ;;  %s1168_s2 = inlined_call_operand.vmem [shape: f32[1,256], index: 2, kind: input, shape index: {}]   ;;  %s1169_s3 = inlined_call_operand.hbm [shape: f32[16,256], index: 3, kind: output, shape index: {}]  }
   0x1   :  { %9 = vsyncpa [#allocation7], 0 }
   0x2   :  { %11 = vsyncpa [#allocation7 + $0x1], 0 }
   0x3   :  { %12 = vsyncpa [#allocation5], 0 }
   0x4   :  { %14 = vsyncpa [#allocation5 + $0x1], 0  ;;  %s919_s12 = smov 0   ;;  %s921_s13 = smov 0  }
   0x5   :  { %s923_s14 = smov 0   ;;  %s925_s15 = smov 0  }
   0x6   :  { %s927_s16 = smov 0   ;;  %s929_s17 = smov 0  }
   0x7 LB: > { %1175 = sst [smem:[#allocation12_spill]] %s886_s17  ;;  %s607_s18 = sadd.s32 4294967295, %s886_s17   ;;  %s886_s17 = sphi %s929_s17, %s20_s17   ;;  %s882_s16 = sphi %s927_s16, %s1195_s16   ;;  %s878_s15 = sphi %s925_s15, %s1194_s15   ;;  %s874_s14 = sphi %s923_s14, %s1193_s14   ;;  %s870_s13 = sphi %s921_s13, %s1192_s13   ;;  %s866_s12 = sphi %s919_s12, %s1191_s12  }
   0x8   : > { %s608_s19 = sadd.s32 4294967294, %s886_s17   ;;  %p83_p0 = scmp.ne.s32.totalorder %s874_s14, %s870_s13 }
   0x9   : > { %p84_p1 = scmp.eq.s32.totalorder %s886_s17, 0  ;;  %p89_p2 = scmp.ne.s32.totalorder %s870_s13, %s866_s12 }
   0xa   : > { %p956_p3 = scmp.eq.s32.totalorder %s607_s18, 0  ;;  %p141_p5 = scmp.eq.s32.totalorder %s607_s18, 1 }
   0xb   : > { %p960_p4 = por %p84_p1, %p83_p0  ;;  %p147_p7 = scmp.eq.s32.totalorder %s608_s19, 1 }
   0xc   : > { %p966_p6 = por %p956_p3, %p89_p2  ;;  %p970_p8 = por %p141_p5, %p83_p0 }
   0xd   : > { %p609_p9 = scmp.ge.s32.totalorder %s886_s17, 1  ;;  %p975_p10 = por %p147_p7, %p89_p2 }
   0xe   : > { %s1178_s22 = scalar_select %p966_p6, 1, 0 }
   0xf   : > { %s1179_s23 = scalar_select %p970_p8, 1, 0 }
  0x10   : > { %s1180_s24 = scalar_select %p975_p10, 1, 0 }
  0x11   : > { %p154_p11 = scmp.lt.s32.totalorder %s886_s17, 3  ;;  %s888_s26 = smov [#allocation3]  }
  0x12   : > { %1181 = sst [smem:[#allocation13_spill]] %s1180_s24  ;;  %s172_s27 = sshll.u32 %s888_s26, 4  ;;  %s173_s27 = int_to_ptr.vmem [resolvable:$true] %s172_s27 }
  0x13   : > { %p980_p12 = pnand %p609_p9, %p154_p11  ;;  %p688_p1 = scmp.lt.s32.totalorder %s886_s17, 2 }
  0x14   : > { %s35_s30 = sadd.s32 1, %s882_s16  ;;  %s759_s4 = scalar_lea.vmem %s173_s27, 1024 }
  0x15   : > { %p675_p13 = pneg %p980_p12  ;;  %p996_p2 = pnand %p688_p1, %p960_p4 }
  0x16   : > { %p760_p9 = scmp.ne.s32.totalorder %s173_s27, %s759_s4  ;;  %p767_p0 = scmp.lt.s32.totalorder %s173_s27, %s173_s27 }
  0x17   : > { %p990_p5 = pnand %p675_p13, %p956_p3  ;;  %p768_p8 = scmp.lt.s32.totalorder %s759_s4, %s759_s4 }
  0x19   : > { %p750_p7 = pneg %p990_p5  ;;  %p769_p6 = por %p768_p8, %p767_p0 }
  0x1b   : > { %p762_p11 = pnand %p760_p9, %p750_p7 }
  0x1d   : > { %p763_p10 = pneg %p762_p11 }
  0x1f   : > { %p770_p13 = pnand %p769_p6, %p763_p10 }
  0x21   : > { %773 = shalt.err (!%p770_p13)
}
  0x22   : > { %s889_s5 = smov 512   ;;  %s890_s6 = smov 32  }
  0x23   : > { %678 = dma.hbm_to_vmem [thread:$0]  (!%p990_p5), %s1166_s0, 1024, %s173_s27, [#allocation4], %s889_s5, %s889_s5, %s890_s6  }
  0x24   : > { %p37_p4 = scmp.ge.s32.totalorder %s35_s30, 2  ;;  %s76_s9 = sadd.s32 1, %s874_s14 }
  0x25   : > { %s186_s10 = sand.u32 1, %s874_s14   ;;  %s613_s19 = sshll.u32 %s882_s16, 7 }
  0x26   : > { %s1197_s30 = smov (%p37_p4, %s35_s30), 0  ;;  %s612_s11 = sshll.u32 %s186_s10, 9 }
  0x27   : > { %s72_s18 = ssub.s32 %s882_s16, %s1197_s30  ;;  %s198_s4 = scalar_lea.hbm %s1167_s1, %s613_s19 }
  0x28   : > { %p74_p6 = scmp.eq.s32.totalorder %s72_s18, 0  ;;  %s190_s28 = scalar_lea.vmem [#allocation6], %s612_s11 }
  0x29   : > { %s199_s17 = sshll.u32 %s190_s28, 4  ;;  %s187_s27 = scalar_lea.sflag [#allocation7], %s186_s10  ;;  %s200_s17 = int_to_ptr.vmem [resolvable:$true] %s199_s17 }
  0x2a   : > { %s1019_s24 = scalar_select %p74_p6, %s874_s14, %s76_s9  }
  0x2b   : > { %p776_p8 = pneg %p996_p2  ;;  %s787_s5 = scalar_lea.vmem %s200_s17, 8192 }
  0x2c   : > { %p788_p10 = scmp.ne.s32.totalorder %s200_s17, %s787_s5  ;;  %s891_s6 = smov [#allocation6]  }
  0x2d   : > { %s792_s7 = sshll.u32 %s891_s6, 4  ;;  %s793_s7 = int_to_ptr.vmem [resolvable:$false] %s792_s7 }
  0x2e   : > { %p790_p0 = pnand %p788_p10, %p776_p8  ;;  %s794_s8 = scalar_lea.vmem %s793_s7, 16384 }
  0x2f   : > { %p795_p5 = scmp.lt.s32.totalorder %s200_s17, %s793_s7  ;;  %p796_p7 = scmp.lt.s32.totalorder %s794_s8, %s787_s5 }
  0x30   : > { %p791_p1 = pneg %p790_p0 }
  0x31   : > { %p797_p9 = por %p796_p7, %p795_p5 }
  0x33   : > { %p798_p11 = pnand %p797_p9, %p791_p1 }
  0x35   : > { %801 = shalt.err (!%p798_p11)
}
  0x36   : > { %s892_s11 = smov 256   ;;  %s893_s9 = smov 128  }
  0x37   : > { %s894_s18 = smov 8   ;;  %217 = sbr.rel (%p980_p12) target bundleno = 322 (0x142), region = 32 }
  0x38   : > { %682 = dma.hbm_to_vmem [thread:$0]  (!%p996_p2), %s198_s4, 8192, %s200_s17, %s187_s27, %s892_s11, %s893_s9, %s894_s18  }
  0x3c   : > { %853 = dma.done.wait (%p956_p3), [#allocation4], 1024  }
  0x3d   : > { %855 = vsyncadd (%p956_p3), [#allocation4], 4294966272  ;;  %s1032_s10 = sand.u32 1, %s870_s13   ;;  %p1185_p2 = scmp.ne.s32.totalorder %s1178_s22, 0 }
  0x3e   : > { %s616_s19 = sshll.u32 %s1032_s10, 9  ;;  %s224_s21 = scalar_lea.sflag [#allocation7], %s1032_s10 }
  0x3f   : > { %s1036_s26 = scalar_lea.vmem [#allocation6], %s616_s19 }
  0x40   : > { %857 = dma.done.wait (%p1185_p2), %s224_s21, 8192  }
  0x41   : > { %859 = vsyncadd (%p1185_p2), %s224_s21, 4294959104  ;;  %v318_v0 = vld [vmem:[%s1036_s26 + $0xf0] sm:$0xff]  ;;  %v319_v1 = vld [vmem:[%s1036_s26 + $0xf8] sm:$0xff]  ;;  %p256_p3 = scmp.lt.s32.totalorder %s878_s15, 1  ;;  %s617_s29 = sshll.u32 %s1032_s10, 4 }
  0x42   : > { %v350_v2 = vld [vmem:[%s1036_s26 + $0x1f0] sm:$0xff]  ;;  %v367_v3 = vpack.c.bf16 %v319_v1, %v318_v0  ;;  %v351_v4 = vld [vmem:[%s1036_s26 + $0x1f8] sm:$0xff]  ;;  %v316_v11 = vld [vmem:[%s1036_s26 + $0xe0] sm:$0xff]  ;;  %s252_s4 = scalar_lea.vmem [#allocation8], %s617_s29  ;;  %s620_s27 = sshll.u32 %s878_s15, 7 }
  0x43   : > { %v302_v5 = vld [vmem:[%s1036_s26 + $0x70] sm:$0xff]  ;;  %v303_v6 = vld [vmem:[%s1036_s26 + $0x78] sm:$0xff]  ;;  %v383_v7 = vpack.c.bf16 %v351_v4, %v350_v2  ;;  %v317_v13 = vld [vmem:[%s1036_s26 + $0xe8] sm:$0xff]  ;;  %s257_s17 = scalar_select %p256_p3, %s878_s15, 1 }
  0x44   : > { %v359_v8 = vpack.c.bf16 %v303_v6, %v302_v5  ;;  %v334_v9 = vld [vmem:[%s1036_s26 + $0x170] sm:$0xff]  ;;  %v335_v10 = vld [vmem:[%s1036_s26 + $0x178] sm:$0xff]  ;;  %623 = vmatprep.subr.bf16.mxu0 %v367_v3  ;;  %v348_v14 = vld [vmem:[%s1036_s26 + $0x1e0] sm:$0xff]  ;;  %v366_v16 = vpack.c.bf16 %v317_v13, %v316_v11  ;;  %s493_s28 = sshll.u32 %s252_s4, 4  ;;  %s1118_s7 = scalar_lea.hbm %s1169_s3, %s620_s27  ;;  %s1113_s28 = int_to_ptr.vmem [resolvable:$true] %s493_s28 }
  0x45   : > { %v375_v12 = vpack.c.bf16 %v335_v10, %v334_v9  ;;  %v349_v15 = vld [vmem:[%s1036_s26 + $0x1e8] sm:$0xff]  ;;  %645 = vmatprep.subr.bf16.mxu1 %v383_v7  ;;  %v300_v18 = vld [vmem:[%s1036_s26 + $0x60] sm:$0xff]  ;;  %v314_v23 = vld [vmem:[%s1036_s26 + $0xd0] sm:$0xff]  ;;  %s258_s25 = scalar_lea.vmem %s1168_s2, %s257_s17  ;;  %s478_s8 = scalar_lea.sflag [#allocation5], %s1032_s10 }
  0x46   : > { %624 = vmatpush3.bf16.msra.mxu0 %v359_v8  ;;  %v382_v17 = vpack.c.bf16 %v349_v15, %v348_v14  ;;  %v301_v19 = vld [vmem:[%s1036_s26 + $0x68] sm:$0xff]  ;;  %v332_v20 = vld [vmem:[%s1036_s26 + $0x160] sm:$0xff]  ;;  %v315_v24 = vld [vmem:[%s1036_s26 + $0xd8] sm:$0xff]  ;;  %s802_s11 = scalar_lea.vmem %s1113_s28, 256  ;;  %p1186_p13 = scmp.ne.s32.totalorder %s1179_s23, 0 }
  0x47   : > { %646 = vmatpush3.bf16.msra.mxu1 %v375_v12  ;;  %v358_v21 = vpack.c.bf16 %v301_v19, %v300_v18  ;;  %v333_v22 = vld [vmem:[%s1036_s26 + $0x168] sm:$0xff]  ;;  %625 = vmatprep.subr.bf16.mxu0 %v366_v16  ;;  %v365_v26 = vpack.c.bf16 %v315_v24, %v314_v23  ;;  %v346_v27 = vld [vmem:[%s1036_s26 + $0x1d0] sm:$0xff]  ;;  %v347_v28 = vld [vmem:[%s1036_s26 + $0x1d8] sm:$0xff]  ;;  %p803_p12 = scmp.ne.s32.totalorder %s1113_s28, %s802_s11  ;;  %s895_s15 = smov [#allocation8]  }
  0x48   : > { %647 = vmatprep.subr.bf16.mxu1 %v382_v17  ;;  %v374_v25 = vpack.c.bf16 %v333_v22, %v332_v20  ;;  %v298_v29 = vld [vmem:[%s1036_s26 + $0x50] sm:$0xff]  ;;  %v381_v30 = vpack.c.bf16 %v347_v28, %v346_v27  ;;  %v299_v31 = vld [vmem:[%s1036_s26 + $0x58] sm:$0xff]  ;;  %v312_v35 = vld [vmem:[%s1036_s26 + $0xc0] sm:$0xff]  ;;  %s806_s9 = sshll.u32 %s895_s15, 4  ;;  %s807_s9 = int_to_ptr.vmem [resolvable:$false] %s806_s9 }
  0x49   : > { %v330_v32 = vld [vmem:[%s1036_s26 + $0x150] sm:$0xff]  ;;  %v331_v33 = vld [vmem:[%s1036_s26 + $0x158] sm:$0xff]  ;;  %v357_v34 = vpack.c.bf16 %v299_v31, %v298_v29  ;;  %v313_v36 = vld [vmem:[%s1036_s26 + $0xc8] sm:$0xff]  ;;  %p804_p4 = pnand %p803_p12, %p1186_p13  ;;  %s808_s18 = scalar_lea.vmem %s807_s9, 512 }
  0x4a   : > { %626 = vmatpush3.bf16.msra.mxu0 %v358_v21  ;;  %v344_v37 = vld [vmem:[%s1036_s26 + $0x1c0] sm:$0xff]  ;;  %v373_v38 = vpack.c.bf16 %v331_v33, %v330_v32  ;;  %v364_v39 = vpack.c.bf16 %v313_v36, %v312_v35  ;;  %v345_v40 = vld [vmem:[%s1036_s26 + $0x1c8] sm:$0xff]  ;;  %v310_v46 = vld [vmem:[%s1036_s26 + $0xb0] sm:$0xff]  ;;  %p809_p8 = scmp.lt.s32.totalorder %s1113_s28, %s807_s9  ;;  %p810_p10 = scmp.lt.s32.totalorder %s808_s18, %s802_s11 }
  0x4b   : > { %648 = vmatpush3.bf16.msra.mxu1 %v374_v25  ;;  %627 = vmatprep.subr.bf16.mxu0 %v365_v26  ;;  %v296_v41 = vld [vmem:[%s1036_s26 + $0x40] sm:$0xff]  ;;  %v297_v42 = vld [vmem:[%s1036_s26 + $0x48] sm:$0xff]  ;;  %v380_v43 = vpack.c.bf16 %v345_v40, %v344_v37  ;;  %v311_v47 = vld [vmem:[%s1036_s26 + $0xb8] sm:$0xff]  ;;  %p805_p6 = pneg %p804_p4 }
  0x4c   : > { %649 = vmatprep.subr.bf16.mxu1 %v381_v30  ;;  %v328_v44 = vld [vmem:[%s1036_s26 + $0x140] sm:$0xff]  ;;  %v329_v45 = vld [vmem:[%s1036_s26 + $0x148] sm:$0xff]  ;;  %v342_v48 = vld [vmem:[%s1036_s26 + $0x1b0] sm:$0xff]  ;;  %v356_v50 = vpack.c.bf16 %v297_v42, %v296_v41  ;;  %v363_v52 = vpack.c.bf16 %v311_v47, %v310_v46  ;;  %p811_p0 = por %p810_p10, %p809_p8 }
  0x4d   : > { %v343_v49 = vld [vmem:[%s1036_s26 + $0x1b8] sm:$0xff]  ;;  %v372_v51 = vpack.c.bf16 %v329_v45, %v328_v44  ;;  %v294_v53 = vld [vmem:[%s1036_s26 + $0x30] sm:$0xff]  ;;  %v308_v58 = vld [vmem:[%s1036_s26 + $0xa0] sm:$0xff] }
  0x4e   : > { %628 = vmatpush3.bf16.msra.mxu0 %v357_v34  ;;  %v295_v54 = vld [vmem:[%s1036_s26 + $0x38] sm:$0xff]  ;;  %v326_v55 = vld [vmem:[%s1036_s26 + $0x130] sm:$0xff]  ;;  %v379_v56 = vpack.c.bf16 %v343_v49, %v342_v48  ;;  %v309_v59 = vld [vmem:[%s1036_s26 + $0xa8] sm:$0xff]  ;;  %p812_p1 = pnand %p811_p0, %p805_p6 }
  0x4f   : > { %650 = vmatpush3.bf16.msra.mxu1 %v373_v38  ;;  %629 = vmatprep.subr.bf16.mxu0 %v364_v39  ;;  %v327_v57 = vld [vmem:[%s1036_s26 + $0x138] sm:$0xff]  ;;  %v340_v60 = vld [vmem:[%s1036_s26 + $0x1a0] sm:$0xff]  ;;  %v341_v61 = vld [vmem:[%s1036_s26 + $0x1a8] sm:$0xff]  ;;  %v355_v62 = vpack.c.bf16 %v295_v54, %v294_v53  ;;  %v362_v0 = vpack.c.bf16 %v309_v59, %v308_v58 }
  0x50   : > { %651 = vmatprep.subr.bf16.mxu1 %v380_v43  ;;  %v371_v63 = vpack.c.bf16 %v327_v57, %v326_v55  ;;  %v292_v1 = vld [vmem:[%s1036_s26 + $0x20] sm:$0xff]  ;;  %v293_v2 = vld [vmem:[%s1036_s26 + $0x28] sm:$0xff]  ;;  %v378_v4 = vpack.c.bf16 %v341_v61, %v340_v60  ;;  %v306_v6 = vld [vmem:[%s1036_s26 + $0x90] sm:$0xff] }
  0x51   : > { %v324_v3 = vld [vmem:[%s1036_s26 + $0x120] sm:$0xff]  ;;  %v325_v5 = vld [vmem:[%s1036_s26 + $0x128] sm:$0xff]  ;;  %v307_v7 = vld [vmem:[%s1036_s26 + $0x98] sm:$0xff]  ;;  %v354_v11 = vpack.c.bf16 %v293_v2, %v292_v1 }
  0x52   : > { %630 = vmatpush3.bf16.msra.mxu0 %v356_v50  ;;  %v338_v8 = vld [vmem:[%s1036_s26 + $0x190] sm:$0xff]  ;;  %v339_v9 = vld [vmem:[%s1036_s26 + $0x198] sm:$0xff]  ;;  %v370_v15 = vpack.c.bf16 %v325_v5, %v324_v3  ;;  %v361_v16 = vpack.c.bf16 %v307_v7, %v306_v6  ;;  %v304_v17 = vld [vmem:[%s1036_s26 + $0x80] sm:$0xff] }
  0x53   : > { %652 = vmatpush3.bf16.msra.mxu1 %v372_v51  ;;  %631 = vmatprep.subr.bf16.mxu0 %v363_v52  ;;  %v290_v10 = vld [vmem:[%s1036_s26 + $0x10] sm:$0xff]  ;;  %v291_v12 = vld [vmem:[%s1036_s26 + $0x18] sm:$0xff]  ;;  %v277_v18 = vld [vmem:[#allocation3 + $0x8] sm:$0xff]  ;;  %v377_v20 = vpack.c.bf16 %v339_v9, %v338_v8 }
  0x54   : > { %653 = vmatprep.subr.bf16.mxu1 %v379_v56  ;;  %v322_v13 = vld [vmem:[%s1036_s26 + $0x110] sm:$0xff]  ;;  %v323_v14 = vld [vmem:[%s1036_s26 + $0x118] sm:$0xff]  ;;  %v281_v19 = vld [vmem:[#allocation3 + $0x28] sm:$0xff]  ;;  %v353_v28 = vpack.c.bf16 %v291_v12, %v290_v10 }
  0x55   : > { %v305_v21 = vld [vmem:[%s1036_s26 + $0x88] sm:$0xff]  ;;  %v285_v22 = vpack.c.bf16 %v281_v19, %v277_v18  ;;  %v279_v23 = vld [vmem:[#allocation3 + $0x18] sm:$0xff]  ;;  %v336_v25 = vld [vmem:[%s1036_s26 + $0x180] sm:$0xff]  ;;  %v369_v29 = vpack.c.bf16 %v323_v14, %v322_v13 }
  0x56   : > { %632 = vmatpush3.bf16.msra.mxu0 %v355_v62  ;;  %v283_v24 = vld [vmem:[#allocation3 + $0x38] sm:$0xff]  ;;  %v337_v26 = vld [vmem:[%s1036_s26 + $0x188] sm:$0xff]  ;;  %v360_v30 = vpack.c.bf16 %v305_v21, %v304_v17  ;;  %v288_v31 = vld [vmem:[%s1036_s26] sm:$0xff] }
  0x57   : > { %654 = vmatpush3.bf16.msra.mxu1 %v371_v63  ;;  %633 = vmatprep.subr.bf16.mxu0 %v362_v0  ;;  %v287_v27 = vpack.c.bf16 %v283_v24, %v279_v23  ;;  %v289_v32 = vld [vmem:[%s1036_s26 + $0x8] sm:$0xff]  ;;  %v376_v33 = vpack.c.bf16 %v337_v26, %v336_v25  ;;  %v320_v34 = vld [vmem:[%s1036_s26 + $0x100] sm:$0xff]  ;;  %v278_v40 = vld [vmem:[#allocation3 + $0x10] sm:$0xff] }
  0x58   : > { %655 = vmatprep.subr.bf16.mxu1 %v378_v4  ;;  %416 = vmatprep.mubr.bf16.mxu0 %v285_v22  ;;  %v321_v35 = vld [vmem:[%s1036_s26 + $0x108] sm:$0xff]  ;;  %v352_v36 = vpack.c.bf16 %v289_v32, %v288_v31  ;;  %v276_v37 = vld [vmem:[#allocation3] sm:$0xff]  ;;  %v282_v41 = vld [vmem:[#allocation3 + $0x30] sm:$0xff] }
  0x59   : > { %457 = vmatprep.mubr.bf16.mxu1 %v287_v27  ;;  %v280_v38 = vld [vmem:[#allocation3 + $0x20] sm:$0xff]  ;;  %v368_v39 = vpack.c.bf16 %v321_v35, %v320_v34  ;;  %v286_v43 = vpack.c.bf16 %v282_v41, %v278_v40 }
  0x5a   : > { %634 = vmatpush3.bf16.msra.mxu0 %v354_v11  ;;  %v284_v42 = vpack.c.bf16 %v280_v38, %v276_v37  ;;  %v618_v51 = vld [vmem:[%s258_s25] ss:$0 sm:$0xff] }
  0x5b   : > { %656 = vmatpush3.bf16.msra.mxu1 %v370_v15  ;;  %635 = vmatprep.subr.bf16.mxu0 %v361_v16 }
  0x5c   : > { %657 = vmatprep.subr.bf16.mxu1 %v377_v20 }
  0x5e   : > { %636 = vmatpush3.bf16.msra.mxu0 %v353_v28 }
  0x5f   : > { %658 = vmatpush3.bf16.msra.mxu1 %v369_v29  ;;  %637 = vmatprep.subr.bf16.mxu0 %v360_v30 }
  0x60   : > { %659 = vmatprep.subr.bf16.mxu1 %v376_v33 }
  0x62   : > { %638 = vmatpush3.bf16.msra.mxu0 %v352_v36 }
  0x63   : > { %660 = vmatpush3.bf16.msra.mxu1 %v368_v39 }
  0x65   : > { %417 = vmatmul.mubr.bf16.vlgmr.msra.gmra.mxu0 %v284_v42 }
  0x66   : > { %458 = vmatmul.mubr.bf16.vlgmr.msra.gmra.mxu1 %v286_v43 }
 0x125   : > { %v639_v44 = vpop.f32.mrf.mxu0 }
 0x126   : > { %v661_v45 = vpop.f32.mrf.mxu1 }
 0x127   : > { %v640_v46 = vpop.f32.mrf.mxu0 }
 0x128   : > { %v641_v47 = vadd.f32 %v640_v46, %v639_v44  ;;  %v662_v48 = vpop.f32.mrf.mxu1 }
 0x129   : > { %v663_v49 = vadd.f32 %v662_v48, %v661_v45  ;;  %v642_v50 = vpop.f32.mrf.mxu0 }
 0x12a   : > { %v664_v52 = vpop.f32.mrf.mxu1 }
 0x12b   : > { %v460_v53 = vadd.f32 %v663_v49, %v641_v47  ;;  %v643_v54 = vpop.f32.mrf.mxu0 }
 0x12c   : > { %v644_v55 = vadd.f32 %v643_v54, %v642_v50  ;;  %v665_v56 = vpop.f32.mrf.mxu1 }
 0x12d   : > { %v466_v57 = vadd.f32 %v618_v51, %v460_v53  ;;  %v666_v58 = vadd.f32 %v665_v56, %v664_v52 }
 0x12f   : > { %475 = vst [vmem:[%s252_s4] sm:$0xff] %v466_v57  ;;  %v463_v59 = vadd.f32 %v666_v58, %v644_v55 }
 0x131   : > { %v467_v60 = vadd.f32 %v618_v51, %v463_v59 }
 0x133   : > { %476 = vst [vmem:[%s252_s4 + $0x8] sm:$0xff] %v467_v60 }
 0x134   : > { %815 = shalt.err (!%p812_p1)
}
 0x135   : > { %s816_s19 = scalar_lea.hbm %s1118_s7, 256  ;;  %s820_s17 = scalar_lea.hbm %s1169_s3, 512 }
 0x136   : > { %p817_p5 = scmp.ne.s32.totalorder %s1118_s7, %s816_s19  ;;  %p821_p11 = scmp.lt.s32.totalorder %s1118_s7, %s1169_s3 }
 0x137   : > { %p822_p2 = scmp.lt.s32.totalorder %s820_s17, %s816_s19 }
 0x138   : > { %p818_p7 = pnand %p817_p5, %p1186_p13 }
 0x139   : > { %p823_p3 = por %p822_p2, %p821_p11 }
 0x13a   : > { %p819_p9 = pneg %p818_p7 }
 0x13c   : > { %p824_p12 = pnand %p823_p3, %p819_p9 }
 0x13e   : > { %827 = shalt.err (!%p824_p12)
}
 0x13f   : > { %s896_s25 = smov 128   ;;  %s897_s29 = smov 256  }
 0x140   : > { %s898_s4 = smov 8  }
 0x141   : > { %673 = dma.vmem_to_hbm [thread:$0]  (%p1186_p13), %s1113_s28, 256, %s1118_s7, %s478_s8, %s896_s25, %s897_s29, %s898_s4  }
 0x142 PF: > { %s1187_s27 = sld [smem:[#allocation13_spill]]  ;;  %s508_s6 = sand.u32 1, %s866_s12  }
 0x143   : > { %s1188_s5 = sld [smem:[#allocation12_spill]]  ;;  %s509_s11 = scalar_lea.sflag [#allocation5], %s508_s6 }
 0x148   : > { %p1189_p4 = scmp.ne.s32.totalorder %s1187_s27, 0 }
 0x149   : > { %p1190_p6 = scmp.ge.s32.totalorder %s1188_s5, 2 }
 0x14b   : > { %p684_p8 = pnand %p1190_p6, %p1189_p4 }
 0x14d   : > { %p685_p10 = pneg %p684_p8 }
 0x14f   : > { %861 = dma.done.wait (%p685_p10), %s509_s11, 256  }
 0x150   : > { %863 = vsyncadd (%p685_p10), %s509_s11, 4294967040  ;;  %s20_s17 = sadd.s32 1, %s1188_s5   ;;  %s1191_s12 = smov %s870_s13 }
 0x151   : > { %p17_p0 = scmp.ge.s32.totalorder %s20_s17, 4   ;;  %s1192_s13 = smov %s874_s14 }
 0x152   : > { %s1193_s14 = smov %s1019_s24  ;;  %s1194_s15 = smov %s882_s16 }
 0x153   : > { %s1195_s16 = smov %s1197_s30  ;;  %19 = sbr.rel (!%p17_p0) target bundleno = 7 (0x7), region = 94 }
 0x158   :  { %514 = vsyncpa [#allocation4], 1 }
 0x159   :  { %516 = vsyncpa [#allocation4 + $0x1], 1 }
 0x15a   :  { %517 = vsyncpa [#allocation7], 1 }
 0x15b   :  { %519 = vsyncpa [#allocation7 + $0x1], 1 }
 0x15c   :  { %520 = vsyncpa [#allocation5], 1 }
 0x15d   :  { %522 = vsyncpa [#allocation5 + $0x1], 1 }

</bundles_post_ra>
